<compile_context>
chip_gen: v7x
topology: tpu7x:2x2x1
jax: 0.10.0
libtpu: 0.0.40
codegen_flags: <defaults>
</compile_context>

<pallas_src>
import numpy as np
import jax
import jax.numpy as jnp
from jax.experimental import pallas as pl
from jax.experimental.pallas import tpu as pltpu


_MIN_STEPS = 8  # target minimum grid steps: pipelining + v7x megacore balance


def precompute_freqt_matrix(in_order: int, out_order: int, alpha: float) -> np.ndarray:
    """Replicates FrequencyTransform._precompute (returns A.T, shape (L1, L2))."""
    L1 = in_order + 1
    L2 = out_order + 1
    beta = 1.0 - alpha * alpha
    arange = np.arange(L1, dtype=np.float64)
    A = np.zeros((L2, L1), dtype=np.float64)
    A[0, :] = alpha ** arange
    if 1 < L2 and 1 < L1:
        A[1, 1:] = A[0, :-1] * beta * arange[1:]
    for i in range(2, L2):
        i1 = i - 1
        for j in range(1, L1):
            j1 = j - 1
            A[i, j] = A[i1, j1] + alpha * (A[i, j1] - A[i1, j])
    return A.T  # (L1, L2)


def _freqt_kernel(c_ref, a_ref, o_ref):
    # Dense matmul on the MXU with f32 accumulation.
    o_ref[...] = jnp.dot(
        c_ref[...], a_ref[...], preferred_element_type=jnp.float32
    ).astype(o_ref.dtype)


def _cdiv(a: int, b: int) -> int:
    return -(-a // b)


def _round_up(x: int, m: int) -> int:
    return ((x + m - 1) // m) * m


def _choose_tile(Bg: int, tile_rows: int) -> int:
    """Pick the grouped-row tile: big for bandwidth, but >= _MIN_STEPS steps."""
    tb = max(64, _round_up(_cdiv(Bg, _MIN_STEPS), 8))   # aim for >= MIN_STEPS steps
    tb = min(tb, max(8, _round_up(tile_rows, 8)))       # cap at requested tile size
    tb = min(tb, _round_up(Bg, 8))                      # never exceed the batch
    return max(8, tb)


def frequency_transform(
    c: jax.Array,
    A: jax.Array,
    *,
    A_big: jax.Array | None = None,
    tile_rows: int = 8192,        # grouped rows per grid step (multiple of 8)
    use_pallas: bool | None = None,
) -> jax.Array:
    """Apply frequency transform: c[..., L1] @ A[L1, L2] -> [..., L2]."""
    L1, L2 = A.shape
    if c.shape[-1] != L1:
        raise ValueError("dimension of cepstrum mismatch")

    lead = c.shape[:-1]
    B = int(np.prod(lead)) if lead else 1

    # Tiny problems: a Pallas launch costs more than the matmul itself.
    if use_pallas is None:
        use_pallas = B >= 8192
    if not use_pallas:
        return jnp.matmul(c, A.astype(c.dtype))

    # --- lane-dense fold: G batch rows -> one row of width G*L1 (>= 128) ------
    if A_big is not None:
        G = A_big.shape[0] // L1
    else:
        G = max(1, _cdiv(128, L1))
        A_big = jnp.kron(jnp.eye(G, dtype=A.dtype), A)   # fallback; prefer cached
    K = G * L1                          # contraction width seen by the MXU
    N = G * L2                          # output lane width
    A_big = A_big.astype(c.dtype)

    # --- grouped-row view (free bitcast when B % G == 0; <=G-1 row pad else) --
    c2d = c.reshape(B, L1)
    B_pad = _round_up(B, G)
    if B_pad != B:
        c2d = jnp.pad(c2d, ((0, B_pad - B), (0, 0)))     # at most G-1 zero rows
    Bg = B_pad // G
    cg = c2d.reshape(Bg, K)

    # --- tiling: ragged last block handled by Pallas (no full-tile padding) ---
    TB = _choose_tile(Bg, tile_rows)
    grid_steps = _cdiv(Bg, TB)

    # --- VMEM budget: double-buffered in/out tiles + resident A_big -----------
    itemsize = jnp.dtype(c.dtype).itemsize
    N_lane = _round_up(N, 128)          # 160 lanes stored as 2 lane-tiles (256)
    K_lane = _round_up(K, 128)
    buf_bytes = 2 * TB * (K_lane + N_lane) * itemsize + 2 * K_lane * N_lane * itemsize
    vmem_limit = int(min(max(buf_bytes + (4 << 20), 16 << 20), 56 << 20))

    # Scheduler hint only (dense FLOP count, not the "useful" per-row FLOPs).
    cost = pl.CostEstimate(
        flops=2 * Bg * K * N,
        transcendentals=0,
        bytes_accessed=itemsize * (Bg * K + Bg * N + K * N),
    )

    out_g = pl.pallas_call(
        _freqt_kernel,
        out_shape=jax.ShapeDtypeStruct((Bg, N), c.dtype),
        grid=(grid_steps,),
        in_specs=[
            pl.BlockSpec((TB, K), lambda i: (i, 0)),   # batch tiles, pipelined
            pl.BlockSpec((K, N), lambda i: (0, 0)),    # A_big resident in VMEM
        ],
        out_specs=pl.BlockSpec((TB, N), lambda i: (i, 0)),
        compiler_params=pltpu.CompilerParams(
            dimension_semantics=("parallel",),         # megacore-shard on v7x
            vmem_limit_bytes=vmem_limit,
        ),
        cost_estimate=cost,
    )(cg, A_big)

    out2d = out_g.reshape(B_pad, L2)
    if B_pad != B:
        out2d = out2d[:B]
    return out2d.reshape(*lead, L2)


class FrequencyTransform:
    """JAX/Pallas port of diffsptk FrequencyTransform (forward only)."""

    def __init__(self, in_order: int, out_order: int, alpha: float = 0.0,
                 dtype=jnp.float32):
        assert 0 <= in_order
        assert 0 <= out_order
        assert abs(alpha) < 1
        self.in_order = in_order
        self.out_order = out_order
        A_np = precompute_freqt_matrix(in_order, out_order, alpha)  # (L1, L2)
        L1 = A_np.shape[0]
        G = max(1, _cdiv(128, L1))
        A_big_np = np.kron(np.eye(G), A_np)                          # host-side, once
        self.G = G
        self.A = jnp.asarray(A_np, dtype=dtype)
        self.A_big = jnp.asarray(A_big_np, dtype=dtype)

    def __call__(self, c: jax.Array, **kwargs) -> jax.Array:
        return frequency_transform(c, self.A, A_big=self.A_big, **kwargs)


if __name__ == "__main__":
    in_order = 7     # M1 -> L1 = 8
    out_order = 9    # M2 -> L2 = 10
    alpha = 0.1

    freqt = FrequencyTransform(in_order, out_order, alpha, dtype=jnp.float32)

    key = jax.random.PRNGKey(0)
    k1, k2, k3 = jax.random.split(key, 3)

    # Case 1: (batch=2, channels=4, frames=16, L1=8) -> B = 128 (multiple of G)
    x1 = jax.random.normal(k1, (2, 4, 16, in_order + 1), dtype=jnp.float32)
    out1 = jax.block_until_ready(freqt(x1, use_pallas=True))
    ref1 = jnp.matmul(x1, freqt.A)
    assert out1.shape == (2, 4, 16, out_order + 1)
    np.testing.assert_allclose(np.asarray(out1), np.asarray(ref1), rtol=1e-5, atol=1e-5)

    # Case 2: ragged batch (3, 50, 8) -> B = 150 (pad-to-G + ragged-block path)
    x2 = jax.random.normal(k2, (3, 50, in_order + 1), dtype=jnp.float32)
    out2 = jax.block_until_ready(freqt(x2, use_pallas=True))
    ref2 = jnp.matmul(x2, freqt.A)
    assert out2.shape == (3, 50, out_order + 1)
    np.testing.assert_allclose(np.asarray(out2), np.asarray(ref2), rtol=1e-5, atol=1e-5)

    # Case 3: (2, 4100, 8) -> B = 8200: auto-Pallas path, multi-step pipelined
    # grid (>= _MIN_STEPS) with a ragged last block handled by Pallas clamping.
    x3 = jax.random.normal(k3, (2, 4100, in_order + 1), dtype=jnp.float32)
    out3 = jax.block_until_ready(freqt(x3))
    ref3 = jnp.matmul(x3, freqt.A)
    assert out3.shape == (2, 4100, out_order + 1)
    np.testing.assert_allclose(np.asarray(out3), np.asarray(ref3), rtol=1e-5, atol=1e-5)

    print("KERNEL_OK")
</pallas_src>

<mosaic_0001>
module attributes {stable_mosaic.version = 11 : i64} {
  func.func @_freqt_kernel(%arg0: i32, %arg1: memref<8x128xf32, #tpu.memory_space<vmem>>, %arg2: memref<128x160xf32, #tpu.memory_space<vmem>>, %arg3: memref<8x160xf32, #tpu.memory_space<vmem>>) attributes {dimension_semantics = [#tpu.dimension_semantics<parallel>], iteration_bounds = array<i64: 1>, scalar_prefetch = 0 : i64, scratch_operands = 0 : i64, tpu.core_type = #tpu.core_type<tc>, window_params = [{transform_indices = @transform_0, window_bounds = array<i64: 8, 128>}, {pipeline_mode = #tpu.pipeline_mode<synchronous>, transform_indices = @transform_1, window_bounds = array<i64: 128, 160>}, {transform_indices = @transform_2, window_bounds = array<i64: 8, 160>}]} {
    %c0 = arith.constant 0 : index
    %c0_0 = arith.constant 0 : index
    %0 = vector.load %arg1[%c0, %c0_0] : memref<8x128xf32, #tpu.memory_space<vmem>>, vector<8x128xf32>
    %c0_1 = arith.constant 0 : index
    %c0_2 = arith.constant 0 : index
    %1 = vector.load %arg2[%c0_1, %c0_2] : memref<128x160xf32, #tpu.memory_space<vmem>>, vector<128x160xf32>
    %cst = arith.constant dense<0.000000e+00> : vector<8x160xf32>
    %2 = tpu.matmul %0, %1, %cst {dimension_numbers = #tpu.dot_dimension_numbers<[1], [0], [0], [1], [0, 0, 1, 1], [], []>} : vector<8x128xf32>, vector<128x160xf32>, vector<8x160xf32> -> vector<8x160xf32>
    %c0_3 = arith.constant 0 : index
    %c0_4 = arith.constant 0 : index
    %3 = vector.load %arg3[%c0_3, %c0_4] : memref<8x160xf32, #tpu.memory_space<vmem>>, vector<8x160xf32>
    tpu.vector_store %arg3[%c0_3, %c0_4], %2 {strides = array<i32>} : memref<8x160xf32, #tpu.memory_space<vmem>>, vector<8x160xf32>,
    return
  }
  func.func @transform_0(%arg0: i32) -> (i32, i32) {
    %c0_i32 = arith.constant 0 : i32
    %c0_i32_0 = arith.constant 0 : i32
    return %arg0, %c0_i32 : i32, i32
  }
  func.func @transform_1(%arg0: i32) -> (i32, i32) {
    %c0_i32 = arith.constant 0 : i32
    %c0_i32_0 = arith.constant 0 : i32
    %c0_i32_1 = arith.constant 0 : i32
    return %c0_i32, %c0_i32_0 : i32, i32
  }
  func.func @transform_2(%arg0: i32) -> (i32, i32) {
    %c0_i32 = arith.constant 0 : i32
    %c0_i32_0 = arith.constant 0 : i32
    return %arg0, %c0_i32 : i32, i32
  }
}

</mosaic_0001>

<bundles_post_ra>
// kernel: tpu_custom_call.1
= control target key start
LH: loop header
LB: loop body
LE: loop exit
PB: predicated region body
PF: predicated region fallthrough
CT: control target
= control target key end

     0   :  { %v191_v7 = vmov 0.0   ;;  %s319_s0 = inlined_call_operand.vmem [shape: f32[8,128], index: 0, kind: input, shape index: {}]   ;;  %s320_s1 = inlined_call_operand.vmem [shape: f32[128,160], index: 1, kind: input, shape index: {}]   ;;  %s321_s2 = inlined_call_operand.hbm [shape: f32[8,160], index: 2, kind: output, shape index: {}]  }
   0x1   :  { %v14_v0 = vld [vmem:[%s320_s1 + $0x8] sm:$0xff]  ;;  %v16_v1 = vld [vmem:[%s320_s1 + $0x18] sm:$0xff]  ;;  %v13_v2 = vld [vmem:[%s320_s1] sm:$0xff]  ;;  %109 = vmatprep.mubr.f32.mxu0 %v191_v7 }
   0x2   :  { %v133_v3 = vpack.c.bf16 %v16_v1, %v14_v0  ;;  %v15_v4 = vld [vmem:[%s320_s1 + $0x10] sm:$0xff]  ;;  %v18_v5 = vld [vmem:[%s320_s1 + $0x28] sm:$0xff]  ;;  %v20_v6 = vld [vmem:[%s320_s1 + $0x38] sm:$0xff] }
   0x3   :  { %v135_v8 = vpack.c.bf16 %v15_v4, %v13_v2  ;;  %v137_v9 = vpack.c.bf16 %v20_v6, %v18_v5  ;;  %v17_v10 = vld [vmem:[%s320_s1 + $0x20] sm:$0xff]  ;;  %v19_v11 = vld [vmem:[%s320_s1 + $0x30] sm:$0xff]  ;;  %v22_v12 = vld [vmem:[%s320_s1 + $0x48] sm:$0xff] }
   0x4   :  { %134 = vmatprep.subr.bf16.mxu0 %v133_v3  ;;  %v24_v13 = vld [vmem:[%s320_s1 + $0x58] sm:$0xff]  ;;  %v139_v14 = vpack.c.bf16 %v19_v11, %v17_v10  ;;  %v21_v16 = vld [vmem:[%s320_s1 + $0x40] sm:$0xff]  ;;  %v23_v17 = vld [vmem:[%s320_s1 + $0x50] sm:$0xff] }
   0x5   :  { %136 = vmatpush1.bf16.msra.mxu0 %v135_v8  ;;  %v141_v15 = vpack.c.bf16 %v24_v13, %v22_v12  ;;  %v26_v18 = vld [vmem:[%s320_s1 + $0x68] sm:$0xff]  ;;  %v28_v19 = vld [vmem:[%s320_s1 + $0x78] sm:$0xff]  ;;  %v143_v20 = vpack.c.bf16 %v23_v17, %v21_v16  ;;  %v25_v22 = vld [vmem:[%s320_s1 + $0x60] sm:$0xff] }
   0x6   :  { %138 = vmatprep.subr.bf16.mxu0 %v137_v9  ;;  %v145_v21 = vpack.c.bf16 %v28_v19, %v26_v18  ;;  %v27_v23 = vld [vmem:[%s320_s1 + $0x70] sm:$0xff]  ;;  %v30_v24 = vld [vmem:[%s320_s1 + $0x88] sm:$0xff]  ;;  %v32_v25 = vld [vmem:[%s320_s1 + $0x98] sm:$0xff] }
   0x9   :  { %140 = vmatpush1.bf16.msra.mxu0 %v139_v14 }
   0xa   :  { %142 = vmatprep.subr.bf16.mxu0 %v141_v15 }
   0xb   :  { %7 = vsyncpa [#allocation3], 0  ;;  %v147_v26 = vpack.c.bf16 %v27_v23, %v25_v22  ;;  %v149_v27 = vpack.c.bf16 %v32_v25, %v30_v24  ;;  %v29_v28 = vld [vmem:[%s320_s1 + $0x80] sm:$0xff]  ;;  %v31_v29 = vld [vmem:[%s320_s1 + $0x90] sm:$0xff]  ;;  %s192_s19 = smov [#allocation2]   ;;  %vm117_vm0 = vcmask 261120  }
   0xc   :  { %v34_v30 = vld [vmem:[%s320_s1 + $0xa8] sm:$0xff]  ;;  %v36_v31 = vld [vmem:[%s320_s1 + $0xb8] sm:$0xff]  ;;  %v151_v32 = vpack.c.bf16 %v31_v29, %v29_v28  ;;  %v33_v34 = vld [vmem:[%s320_s1 + $0xa0] sm:$0xff]  ;;  %s125_s20 = sshll.u32 %s192_s19, 4  ;;  %s126_s20 = int_to_ptr.vmem [resolvable:$true] %s125_s20 }
   0xd   :  { %144 = vmatpush1.bf16.msra.mxu0 %v143_v20  ;;  %v153_v33 = vpack.c.bf16 %v36_v31, %v34_v30  ;;  %v35_v35 = vld [vmem:[%s320_s1 + $0xb0] sm:$0xff]  ;;  %v38_v36 = vld [vmem:[%s320_s1 + $0xc8] sm:$0xff]  ;;  %v40_v37 = vld [vmem:[%s320_s1 + $0xd8] sm:$0xff]  ;;  %s167_s21 = scalar_lea.vmem %s126_s20, 256  ;;  %p172_p1 = scmp.lt.s32.totalorder %s126_s20, %s126_s20 }
   0xe   :  { %146 = vmatprep.subr.bf16.mxu0 %v145_v21  ;;  %v155_v38 = vpack.c.bf16 %v35_v35, %v33_v34  ;;  %v157_v39 = vpack.c.bf16 %v40_v37, %v38_v36  ;;  %v37_v40 = vld [vmem:[%s320_s1 + $0xc0] sm:$0xff]  ;;  %v39_v41 = vld [vmem:[%s320_s1 + $0xd0] sm:$0xff]  ;;  %v42_v42 = vld [vmem:[%s320_s1 + $0xe8] sm:$0xff]  ;;  %p168_p0 = scmp.ne.s32.totalorder %s126_s20, %s167_s21  ;;  %p173_p2 = scmp.lt.s32.totalorder %s167_s21, %s167_s21 }
   0xf   :  { %v44_v43 = vld [vmem:[%s320_s1 + $0xf8] sm:$0xff]  ;;  %v159_v44 = vpack.c.bf16 %v39_v41, %v37_v40  ;;  %v41_v46 = vld [vmem:[%s320_s1 + $0xe0] sm:$0xff]  ;;  %v43_v47 = vld [vmem:[%s320_s1 + $0xf0] sm:$0xff] }
  0x10   :  { %v161_v45 = vpack.c.bf16 %v44_v43, %v42_v42  ;;  %v163_v48 = vpack.c.bf16 %v43_v47, %v41_v46  ;;  %v12_v49 = vld [vmem:[%s319_s0] sm:$0xff]  ;;  %p174_p3 = por %p173_p2, %p172_p1 }
  0x11   :  { %148 = vmatpush1.bf16.msra.mxu0 %v147_v26 }
  0x12   :  { %150 = vmatprep.subr.bf16.mxu0 %v149_v27  ;;  %p175_p4 = pnand %p174_p3, %p168_p0 }
  0x15   :  { %152 = vmatpush1.bf16.msra.mxu0 %v151_v32 }
  0x16   :  { %154 = vmatprep.subr.bf16.mxu0 %v153_v33 }
  0x19   :  { %156 = vmatpush1.bf16.msra.mxu0 %v155_v38 }
  0x1a   :  { %158 = vmatprep.subr.bf16.mxu0 %v157_v39 }
  0x1d   :  { %160 = vmatpush1.bf16.msra.mxu0 %v159_v44 }
  0x1e   :  { %162 = vmatprep.subr.bf16.mxu0 %v161_v45 }
  0x21   :  { %164 = vmatpush1.bf16.msra.mxu0 %v163_v48 }
  0x24   :  { %110 = vmatmul.mubr.f32.vlgmr.msra.gmra.mrb[0].mxu0 %v12_v49 }
  0xf7   :  { %v111_v50 = vpop.f32.mrb[0].mxu0 }
  0xf8   :  { %116 = vst [vmem:[#allocation2] sm:$0xff] %v111_v50  ;;  %v113_v51 = vpop.f32.mrb[1].mxu0 }
  0xf9   :  { %118 = vst.msk [vmem:[#allocation2 + $0x8] sm:$0xff] %vm117_vm0, %v113_v51 }
  0xfa   :  { %178 = shalt.err (!%p175_p4)
}
  0xfb   :  { %s179_s0 = scalar_lea.hbm %s321_s2, 256 }
  0xfc   :  { %p180_p5 = scmp.ne.s32.totalorder %s321_s2, %s179_s0  ;;  %p183_p6 = scmp.lt.u32.totalorder %s179_s0, %s321_s2 }
  0xfe   :  { %p185_p7 = pnand %p183_p6, %p180_p5 }
 0x100   :  { %188 = shalt.err (!%p185_p7)
}
 0x101   :  { %128 = dma.vmem_to_hbm [thread:$0]  %s126_s20, 256, %s321_s2, [#allocation3]  }
 0x102   :  { %189 = dma.done.wait [#allocation3], 256  }
 0x103   :  { %190 = vsyncadd [#allocation3], 4294967040 }
 0x104   :  { %132 = vsyncpa [#allocation3], 1 }

</bundles_post_ra>
